<compile_context>
chip_gen: v5e
topology: v5e:2x2
jax: 0.10.0
libtpu: 0.0.40
codegen_flags: <defaults>
</compile_context>

<pallas_src>
import jax
import jax.numpy as jnp
from jax import lax
from jax.experimental import pallas as pl
from jax.experimental.pallas import tpu as pltpu


# ----------------------------------------------------------------------------
# Kernel
# ----------------------------------------------------------------------------
def _rope_kernel(x_ref, sin_ref, cos_ref, o_ref):
    """x_ref/o_ref: (rt, ct) interleaved pairs along lanes.
    sin_ref: (1, ct) = [-sin0, +sin0, -sin1, +sin1, ...]
    cos_ref: (1, ct) = [ cos0,  cos0,  cos1,  cos1, ...]
    """
    x = x_ref[...]                              # (rt, ct)
    s_tab = sin_ref[...]                        # (1, ct), broadcasts over rows
    c_tab = cos_ref[...]                        # (1, ct)

    ct = x.shape[-1]
    # Pair swap along the lane axis: swap[2i] = x[2i+1], swap[2i+1] = x[2i].
    # roll(x, ct-1) == roll by -1 -> element j+1; roll(x, 1) -> element j-1.
    # Tile starts are even offsets, so wrap-around lanes are never selected.
    x_next = pltpu.roll(x, ct - 1, axis=1)
    x_prev = pltpu.roll(x, 1, axis=1)
    lane = lax.broadcasted_iota(jnp.int32, x.shape, dimension=1)
    is_even = (lane & 1) == 0
    x_swap = jnp.where(is_even, x_next, x_prev)

    o_ref[...] = (x * c_tab + x_swap * s_tab).astype(o_ref.dtype)


# ----------------------------------------------------------------------------
# Tiling heuristic
# ----------------------------------------------------------------------------
def _pick_tiles(b, n, itemsize):
    """Pick (row_tile, col_tile) for an (b, n) elementwise kernel."""
    # Column (lane) tile: a multiple of 128 dividing n, capped so per-block
    # VMEM stays small; otherwise use the full extent (always legal).
    col_cap = 32768  # elements (128 KiB at f32)
    if n <= col_cap or n % 128 != 0:
        ct = n
    else:
        ct = 128
        c = col_cap - (col_cap % 128)
        while c >= 128:
            if n % c == 0:
                ct = c
                break
            c -= 128

    # Row (sublane) tile: aim for ~2 MiB per x block.  Keep it a multiple of 8
    # dividing b, or the full batch extent (both satisfy the (8,128) rule).
    target_rows = max(1, (2 * 1024 * 1024 // itemsize) // ct)
    if b <= target_rows:
        rt = b
    else:
        rt = b
        r = (target_rows // 8) * 8
        while r >= 8:
            if b % r == 0:
                rt = r
                break
            r -= 8
    return rt, ct


# ----------------------------------------------------------------------------
# Pallas wrapper
# ----------------------------------------------------------------------------
def rope_forward(x, sin_flat, cos_flat):
    """x: (b, s, d).  sin_flat/cos_flat: (1, s*d) pre-interleaved tables.

    Returns (b, s, d) rotated embeddings (interleaved-pair RoPE convention).
    """
    b, s, d = x.shape
    assert d % 2 == 0, "RoPE requires an even dim"
    n = s * d
    assert sin_flat.shape == (1, n) and cos_flat.shape == (1, n)

    x2 = x.reshape(b, n)  # metadata-only reshape (contiguous last dims)
    rt, ct = _pick_tiles(b, n, x.dtype.itemsize)

    # Grid: (column tiles, row tiles).  Rows are innermost so the sin/cos
    # table block (which only depends on the column index) is fetched once
    # per column tile and re-used across the whole batch.
    grid = (n // ct, b // rt)

    x_spec = pl.BlockSpec((rt, ct), lambda cj, ri: (ri, cj))
    t_spec = pl.BlockSpec((1, ct), lambda cj, ri: (0, cj))

    out2 = pl.pallas_call(
        _rope_kernel,
        out_shape=jax.ShapeDtypeStruct((b, n), x.dtype),
        grid=grid,
        in_specs=[x_spec, t_spec, t_spec],
        out_specs=x_spec,
        compiler_params=pltpu.CompilerParams(
            dimension_semantics=("parallel", "parallel")
        ),
    )(x2, sin_flat, cos_flat)

    return out2.reshape(b, s, d)


# ----------------------------------------------------------------------------
# Module
# ----------------------------------------------------------------------------
class RoPE:
    """JAX equivalent of the PyTorch RoPE module (forward only)."""
    # TODO(synk): backward (rope_backward / autograd.Function) not implemented.

    def __init__(self, dim: int, seq_len: int, table_dtype=jnp.float32):
        self.dim = dim
        self.seq_len = seq_len
        half = dim // 2
        position = jnp.arange(seq_len, dtype=jnp.float32)[:, None]       # (s, 1)
        div_term = jnp.exp(
            jnp.arange(half, dtype=jnp.float32)
            * (-jnp.log(jnp.float32(10000.0)) / half)
        )                                                                # (half,)
        angles = position * div_term                                     # (s, half)
        sin_t = jnp.sin(angles)
        cos_t = jnp.cos(angles)

        # Original-convention tables, kept for reference checking / API parity.
        self.sin_table = sin_t[None]                                     # (1, s, half)
        self.cos_table = cos_t[None]                                     # (1, s, half)

        # Pre-interleaved, sign-baked tables for the fused kernel: (1, s*d).
        #   cos_flat = [c0, c0, c1, c1, ...]   sin_flat = [-s0, +s0, -s1, +s1, ...]
        # For bf16 activations pass table_dtype=jnp.bfloat16 to halve table bytes.
        cos_full = jnp.stack([cos_t, cos_t], axis=-1).reshape(seq_len, dim)
        sin_signed = jnp.stack([-sin_t, sin_t], axis=-1).reshape(seq_len, dim)
        self.cos_flat = cos_full.reshape(1, seq_len * dim).astype(table_dtype)
        self.sin_flat = sin_signed.reshape(1, seq_len * dim).astype(table_dtype)

    def __call__(self, x):
        b, s, d = x.shape
        assert s == self.seq_len and d == self.dim
        # No per-batch broadcast of the tables: the kernel index_map re-uses
        # the single (1, s*d) table block for every batch row.
        return rope_forward(x, self.sin_flat, self.cos_flat)


# ----------------------------------------------------------------------------
# Pure-JAX reference (original half-table convention)
# ----------------------------------------------------------------------------
def _rope_ref(x, sin_t, cos_t):
    b, s, d = x.shape
    xp = x.reshape(b, s, d // 2, 2)
    xe, xo = xp[..., 0], xp[..., 1]
    oe = xe * cos_t - xo * sin_t
    oo = xe * sin_t + xo * cos_t
    return jnp.stack([oe, oo], axis=-1).reshape(b, s, d)


if __name__ == "__main__":
    batch, seq_len, dim = 2, 8, 32
    key = jax.random.PRNGKey(0)
    x = jax.random.normal(key, (batch, seq_len, dim), dtype=jnp.float32)

    rope = RoPE(dim=dim, seq_len=seq_len)
    out = jax.block_until_ready(rope(x))

    # Correctness check against the pure-JAX reference.
    sin_e = jnp.broadcast_to(rope.sin_table, (batch, seq_len, dim // 2))
    cos_e = jnp.broadcast_to(rope.cos_table, (batch, seq_len, dim // 2))
    ref = _rope_ref(x, sin_e, cos_e)
    assert out.shape == (batch, seq_len, dim)
    assert jnp.allclose(out, ref, atol=1e-5, rtol=1e-5)

    print("KERNEL_OK")
</pallas_src>

<mosaic_0001>
module attributes {stable_mosaic.version = 11 : i64} {
  func.func @_rope_kernel(%arg0: i32, %arg1: i32, %arg2: memref<2x256xf32, #tpu.memory_space<vmem>>, %arg3: memref<1x256xf32, #tpu.memory_space<vmem>>, %arg4: memref<1x256xf32, #tpu.memory_space<vmem>>, %arg5: memref<2x256xf32, #tpu.memory_space<vmem>>) attributes {dimension_semantics = [#tpu.dimension_semantics<parallel>, #tpu.dimension_semantics<parallel>], iteration_bounds = array<i64: 1, 1>, scalar_prefetch = 0 : i64, scratch_operands = 0 : i64, tpu.core_type = #tpu.core_type<tc>, window_params = [{transform_indices = @transform_0, window_bounds = array<i64: 2, 256>}, {transform_indices = @transform_1, window_bounds = array<i64: 1, 256>}, {transform_indices = @transform_2, window_bounds = array<i64: 1, 256>}, {transform_indices = @transform_3, window_bounds = array<i64: 2, 256>}]} {
    %c0 = arith.constant 0 : index
    %c0_0 = arith.constant 0 : index
    %0 = vector.load %arg2[%c0, %c0_0] : memref<2x256xf32, #tpu.memory_space<vmem>>, vector<2x256xf32>
    %c0_1 = arith.constant 0 : index
    %c0_2 = arith.constant 0 : index
    %1 = vector.load %arg3[%c0_1, %c0_2] : memref<1x256xf32, #tpu.memory_space<vmem>>, vector<1x256xf32>
    %c0_3 = arith.constant 0 : index
    %c0_4 = arith.constant 0 : index
    %2 = vector.load %arg4[%c0_3, %c0_4] : memref<1x256xf32, #tpu.memory_space<vmem>>, vector<1x256xf32>
    %c255_i32 = arith.constant 255 : i32
    %3 = tpu.dynamic_rotate %0 by %c255_i32 dim 1 : vector<2x256xf32>, i32 -> vector<2x256xf32>
    %c1_i32 = arith.constant 1 : i32
    %4 = tpu.dynamic_rotate %0 by %c1_i32 dim 1 : vector<2x256xf32>, i32 -> vector<2x256xf32>
    %5 = tpu.iota {dimensions = array<i32: 1>} : vector<2x256xi32>
    %c1_i32_5 = arith.constant 1 : i32
    %6 = vector.broadcast %c1_i32_5 : i32 to vector<2x256xi32>
    %7 = arith.andi %5, %6 : vector<2x256xi32>
    %c0_i32 = arith.constant 0 : i32
    %8 = vector.broadcast %c0_i32 : i32 to vector<2x256xi32>
    %9 = arith.cmpi eq, %7, %8 : vector<2x256xi32>
    %10 = arith.select %9, %3, %4 : vector<2x256xi1>, vector<2x256xf32>
    %11 = vector.broadcast %2 : vector<1x256xf32> to vector<2x256xf32>
    %12 = arith.mulf %0, %11 : vector<2x256xf32>
    %13 = vector.broadcast %1 : vector<1x256xf32> to vector<2x256xf32>
    %14 = arith.mulf %10, %13 : vector<2x256xf32>
    %15 = arith.addf %12, %14 : vector<2x256xf32>
    %c0_6 = arith.constant 0 : index
    %c0_7 = arith.constant 0 : index
    %16 = vector.load %arg5[%c0_6, %c0_7] : memref<2x256xf32, #tpu.memory_space<vmem>>, vector<2x256xf32>
    tpu.vector_store %arg5[%c0_6, %c0_7], %15 {strides = array<i32>} : memref<2x256xf32, #tpu.memory_space<vmem>>, vector<2x256xf32>,
    return
  }
  func.func @transform_0(%arg0: i32, %arg1: i32) -> (i32, i32) {
    %c0_i32 = arith.constant 0 : i32
    return %arg1, %arg0 : i32, i32
  }
  func.func @transform_1(%arg0: i32, %arg1: i32) -> (i32, i32) {
    %c0_i32 = arith.constant 0 : i32
    %c0_i32_0 = arith.constant 0 : i32
    return %c0_i32, %arg0 : i32, i32
  }
  func.func @transform_2(%arg0: i32, %arg1: i32) -> (i32, i32) {
    %c0_i32 = arith.constant 0 : i32
    %c0_i32_0 = arith.constant 0 : i32
    return %c0_i32, %arg0 : i32, i32
  }
  func.func @transform_3(%arg0: i32, %arg1: i32) -> (i32, i32) {
    %c0_i32 = arith.constant 0 : i32
    return %arg1, %arg0 : i32, i32
  }
}

</mosaic_0001>

<bundles_post_ra>
// kernel: tpu_custom_call.1
= control target key start
LH: loop header
LB: loop body
LE: loop exit
PB: predicated region body
PF: predicated region fallthrough
CT: control target
= control target key end

     0   :  { %8 = vsyncpa [#allocation3], 0  ;;  %s281_s0 = inlined_call_operand.hbm [shape: f32[2,256], index: 0, kind: input, shape index: {}]   ;;  %s282_s1 = inlined_call_operand.hbm [shape: f32[1,256], index: 1, kind: input, shape index: {}]   ;;  %s283_s2 = inlined_call_operand.hbm [shape: f32[1,256], index: 2, kind: input, shape index: {}]   ;;  %s284_s3 = inlined_call_operand.hbm [shape: f32[2,256], index: 3, kind: output, shape index: {}]  }
   0x1   :  { %9 = vsyncpa [#allocation6], 0  ;;  %s27_s14 = sshll.u32 %s282_s1, 4  ;;  %s28_s14 = int_to_ptr.hbm [resolvable:$true] %s27_s14 }
   0x2   :  { %10 = vsyncpa [#allocation4], 0  ;;  %s241_s15 = smov [#allocation5]   ;;  %s16_s19 = sshll.u32 %s281_s0, 4  ;;  %s17_s19 = int_to_ptr.hbm [resolvable:$true] %s16_s19 }
   0x3   :  { %s29_s16 = sshll.u32 %s241_s15, 4  ;;  %s242_s20 = smov [#allocation2]   ;;  %s30_s16 = int_to_ptr.vmem [resolvable:$true] %s29_s16 }
   0x4   :  { %32 = dma.hbm_to_vmem [thread:$0]  %s28_s14, 32, %s30_s16, [#allocation6]  }
   0x5   :  { %s18_s21 = sshll.u32 %s242_s20, 4  ;;  %s38_s24 = sshll.u32 %s283_s2, 4  ;;  %s19_s21 = int_to_ptr.vmem [resolvable:$true] %s18_s21  ;;  %s39_s24 = int_to_ptr.hbm [resolvable:$true] %s38_s24 }
   0x6   :  { %21 = dma.hbm_to_vmem [thread:$0]  %s17_s19, 64, %s19_s21, [#allocation3]  }
   0x7   :  { %s243_s1 = smov [#allocation7]  }
   0x8   :  { %s40_s25 = sshll.u32 %s243_s1, 4  ;;  %s41_s25 = int_to_ptr.vmem [resolvable:$true] %s40_s25 }
   0x9   :  { %43 = dma.hbm_to_vmem [thread:$0]  %s39_s24, 32, %s41_s25, [#allocation6]  }
   0xa   :  { %235 = dma.done.wait [#allocation3], 64  }
   0xb   :  { %236 = vsyncadd [#allocation3], 4294967232 }
   0xc   :  { %237 = dma.done.wait [#allocation6], 64  }
   0xd   :  { %238 = vsyncadd [#allocation6], 4294967232  ;;  %v56_v0 = vld [vmem:[#allocation2] sm:$0xf]  ;;  %s244_s0 = smov 127   ;;  %s245_s2 = smov 1   ;;  %v69_v5 = vlaneseq }
   0xe   :  { %60 = vst [vmem:[#allocation1] ss:$4 sm:$0xff] %v56_v0  ;;  %v58_v8 = vld [vmem:[#allocation7] sm:$0x3]  ;;  %v57_v14 = vld [vmem:[#allocation5] sm:$0x3] }
   0xf   :  { %v70_v7 = vand.u32 127, %v69_v5  ;;  %v95_v11 = vperm.slane %v58_v8, 1  ;;  %v94_v15 = vperm.slane %v58_v8, 0  ;;  %vm97_vm0 = vcmask 1041408   ;;  %s246_s26 = smov [#allocation8]   ;;  %s122_s30 = sshll.u32 %s284_s3, 4  ;;  %s123_s30 = int_to_ptr.hbm [resolvable:$true] %s122_s30 }
  0x10   :  { %v103_v18 = vperm.slane %v57_v14, 1  ;;  %v102_v19 = vperm.slane %v57_v14, 0  ;;  %s120_s27 = sshll.u32 %s246_s26, 4  ;;  %s121_s27 = int_to_ptr.vmem [resolvable:$true] %s120_s27 }
  0x11   :  { %v86_v9 = vadd.s32 128, %v70_v7  ;;  %v87_v12 = vand.u32 1, %v70_v7  ;;  %v96_v16 = vrot.slane %v95_v11, 6  ;;  %vm71_vm1 = vcmp.lt.s32.totalorder %v70_v7, 127 }
  0x12   :  { %vm83_vm2 = vcmp.lt.s32.totalorder %v70_v7, 1 }
  0x13   :  { %v88_v13 = vand.u32 1, %v86_v9  ;;  %vm89_vm3 = vcmp.eq.s32.totalorder %v87_v12, 0  ;;  %v98_v21 = vsel %vm97_vm0, %v94_v15, %v96_v16 }
  0x14   :  { %v100_v29 = vmul.f32 %v98_v21, %v56_v0 }
  0x15   :  { %v61_v1 = vld.sshfl [vmem:[#allocation1] sm:$0xff pattern:$0x73625140]  ;;  %v62_v2 = vld.sshfl [vmem:[#allocation1 + $0x8] sm:$0xff pattern:$0x73625140] }
  0x16   :  { %65 = vrot.lane.b32.xlu0 %v61_v1, %s244_s0  ;;  %74 = vst [vmem:[#allocation1] ss:$4 sm:$0xff] %v56_v0  ;;  %vm90_vm4 = vcmp.eq.s32.totalorder %v88_v13, 0 }
  0x1d   :  { %v75_v3 = vld.sshfl [vmem:[#allocation1] sm:$0xff pattern:$0x73625140]  ;;  %v76_v4 = vld.sshfl [vmem:[#allocation1 + $0x8] sm:$0xff pattern:$0x73625140] }
  0x1e   :  { %67 = vrot.lane.b32.xlu0 %v62_v2, %s244_s0  ;;  %79 = vrot.lane.b32.xlu1 %v75_v3, %s245_s2 }
  0x26   :  { %81 = vrot.lane.b32.xlu1 %v76_v4, %s245_s2 }
  0x88   :  { %v66_v6 = vpop.permute.xlu0 %65 }
  0x90   :  { %v80_v10 = vpop.permute.xlu1 %79  ;;  %v68_v17 = vpop.permute.xlu0 %67 }
  0x91   :  { %v72_v22 = vsel %vm71_vm1, %v66_v6, %v68_v17  ;;  %v73_v23 = vsel %vm71_vm1, %v68_v17, %v66_v6 }
  0x98   :  { %v82_v20 = vpop.permute.xlu1 %81 }
  0x99   :  { %v84_v24 = vsel %vm83_vm2, %v80_v10, %v82_v20  ;;  %v85_v25 = vsel %vm83_vm2, %v82_v20, %v80_v10 }
  0x9a   :  { %v91_v26 = vsel %vm89_vm3, %v72_v22, %v85_v25  ;;  %v92_v27 = vsel %vm90_vm4, %v73_v23, %v84_v24 }
  0x9b   :  { %v107_v28 = vmul.f32 %v103_v18, %v92_v27  ;;  %v106_v30 = vmul.f32 %v102_v19, %v91_v26 }
  0x9d   :  { %v110_v31 = vrot.slane %v107_v28, 6 }
  0x9f   :  { %v111_v32 = vsel %vm97_vm0, %v106_v30, %v110_v31 }
  0xa0   :  { %v113_v33 = vadd.f32 %v111_v32, %v100_v29 }
  0xa2   :  { %114 = vst [vmem:[#allocation8] sm:$0xf] %v113_v33 }
  0xa3   :  { %125 = dma.vmem_to_hbm [thread:$0]  %s121_s27, 64, %s123_s30, [#allocation4]  }
  0xa4   :  { %239 = dma.done.wait [#allocation4], 64  }
  0xa5   :  { %240 = vsyncadd [#allocation4], 4294967232 }
  0xa6   :  { %130 = vsyncpa [#allocation3], 1 }
  0xa7   :  { %131 = vsyncpa [#allocation6], 1 }
  0xa8   :  { %132 = vsyncpa [#allocation4], 1 }

</bundles_post_ra>
